<compile_context>
chip_gen: v6e
topology: v6e:2x2x1
jax: 0.10.0
libtpu: 0.0.40
codegen_flags: <defaults>
</compile_context>

<pallas_src>
import functools

import numpy as np
import jax
import jax.numpy as jnp
from jax.experimental import pallas as pl
from jax.experimental.pallas import tpu as pltpu


def _round_up(x, m):
    return (x + m - 1) // m * m


def _prep_kernel(logw_ref, covs_ref, weights_ref, lflat_ref, *, C, D):
    """One-shot: softmax weights + flattened lower-triangular Cholesky."""
    # ---- softmax over components -------------------------------------------
    logw = logw_ref[...]                                    # (1, C)
    m = jnp.max(logw, axis=-1, keepdims=True)
    e = jnp.exp(logw - m)
    weights_ref[...] = e * pl.reciprocal(jnp.sum(e, axis=-1, keepdims=True))

    # ---- build flattened row-major lower-Cholesky (C, D*D), softplus diag ---
    covs = covs_ref[...]                                    # (C, T)
    pos = jax.lax.broadcasted_iota(jnp.int32, (C, D * D), 1)
    lflat = jnp.zeros((C, D * D), jnp.float32)
    for r in range(D):                                      # D static: unrolled
        for cc in range(r + 1):
            k = r * (r + 1) // 2 + cc                       # packed tril index
            val = covs[:, k:k + 1]                          # (C, 1)
            if r == cc:
                val = jnp.logaddexp(val, 0.0)               # softplus on diag
            lflat = jnp.where(pos == (r * D + cc), val, lflat)
    lflat_ref[...] = lflat


def _sample_kernel(means_ref, lmat_ref, idx_ref, z_ref, out_ref, *, C, D):
    """Per-tile sampling: out = means[idx] + L[idx] @ z  (batch on lanes).

    means_ref : SMEM (C, D)        f32
    lmat_ref  : SMEM (C, D*D)      f32 (row-major lower-Cholesky)
    idx_ref   : VMEM (1, BT)       int32
    z_ref     : VMEM (D, BT)       f32
    out_ref   : VMEM (D, BT)       f32
    """
    idx = idx_ref[...]                                      # (1, BT)
    z = z_ref[...]                                          # (D, BT)
    rows = [None] * D
    for c in range(C):                                      # C static: unrolled
        sel = idx == c                                      # (1, BT)
        for i in range(D):
            # candidate y = mu_c[i] + sum_{j<=i} L_c[i, j] * z[j]
            y = lmat_ref[c, i * D] * z[0:1, :]
            for j in range(1, i + 1):
                y = y + lmat_ref[c, i * D + j] * z[j:j + 1, :]
            y = y + means_ref[c, i]
            # components are mutually exclusive -> overwrite-select, no adds
            rows[i] = y if c == 0 else jnp.where(sel, y, rows[i])
    out_ref[...] = jnp.concatenate(rows, axis=0) if D > 1 else rows[0]


@functools.partial(jax.jit, static_argnums=(0,))
def gmm_forward(batch_size, means, log_weights, covs, key):
    """Mirrors GMM.forward: returns (samples, means, lower_cholesky, weights)."""
    C, D = means.shape
    T = D * (D + 1) // 2
    assert covs.shape == (C, T)

    # batch tiling: lane-dense, multiple of 128, <= 4096 samples per grid step
    tile = min(4096, _round_up(batch_size, 128))
    b_pad = _round_up(batch_size, tile)

    k_idx, k_z = jax.random.split(key)
    # torch.multinomial(softmax(log_weights), B, replacement=True)
    idx = jax.random.categorical(k_idx, log_weights, shape=(b_pad,))
    idx = idx.astype(jnp.int32).reshape(1, b_pad)
    # torch.randn((B, D)) -- generated batch-on-lanes
    z = jax.random.normal(k_z, (D, b_pad), dtype=jnp.float32)

    vmem = pl.BlockSpec(memory_space=pltpu.MemorySpace.VMEM)
    smem = pl.BlockSpec(memory_space=pltpu.MemorySpace.SMEM)

    # ---- one-shot prep kernel (softmax + Cholesky build) --------------------
    weights, lflat = pl.pallas_call(
        functools.partial(_prep_kernel, C=C, D=D),
        in_specs=[vmem, vmem],
        out_specs=[vmem, vmem],
        out_shape=[
            jax.ShapeDtypeStruct((1, C), jnp.float32),       # softmax weights
            jax.ShapeDtypeStruct((C, D * D), jnp.float32),   # L flat row-major
        ],
    )(log_weights.reshape(1, C), covs)

    # ---- tiled sampling kernel over the (padded) batch ----------------------
    samples_t = pl.pallas_call(
        functools.partial(_sample_kernel, C=C, D=D),
        grid=(b_pad // tile,),
        in_specs=[
            smem,                                            # means (C, D)
            smem,                                            # lflat (C, D*D)
            pl.BlockSpec((1, tile), lambda b: (0, b)),       # idx (1, b_pad)
            pl.BlockSpec((D, tile), lambda b: (0, b)),       # z   (D, b_pad)
        ],
        out_specs=pl.BlockSpec((D, tile), lambda b: (0, b)),
        out_shape=jax.ShapeDtypeStruct((D, b_pad), jnp.float32),
        compiler_params=pltpu.CompilerParams(
            dimension_semantics=("parallel",)),
    )(means, lflat, idx, z)

    samples = samples_t[:, :batch_size].T                    # (B, D)
    return samples, means, lflat.reshape(C, D, D), weights.reshape(C)


def _reference(batch_size, means, log_weights, covs, key):
    """Pure-JAX reference using the exact same RNG draws as gmm_forward."""
    C, D = means.shape
    tile = min(4096, _round_up(batch_size, 128))
    b_pad = _round_up(batch_size, tile)
    k_idx, k_z = jax.random.split(key)
    idx = jax.random.categorical(k_idx, log_weights, shape=(b_pad,))
    idx = idx.astype(jnp.int32)[:batch_size]
    z = jax.random.normal(k_z, (D, b_pad), dtype=jnp.float32)[:, :batch_size].T
    w = jax.nn.softmax(log_weights)
    rows, cols = np.tril_indices(D)
    L = jnp.zeros((C, D, D), jnp.float32).at[:, rows, cols].set(covs)
    diag = np.arange(D)
    L = L.at[:, diag, diag].set(jax.nn.softplus(L[:, diag, diag]))
    samples = means[idx] + jnp.einsum('bij,bj->bi', L[idx], z)
    return samples, means, L, w


if __name__ == "__main__":
    key = jax.random.PRNGKey(0)
    k_means, k_covs, k_fwd = jax.random.split(key, 3)

    # GMM(components=4, dimensions=2, width=1.0, std=1.0)
    components, dimensions = 4, 2
    width, std = 1.0, 1.0
    T = dimensions * (dimensions + 1) // 2

    means = width * jax.random.normal(k_means, (components, dimensions),
                                      dtype=jnp.float32)
    log_weights = jnp.ones((components,), dtype=jnp.float32)
    covs = std * jax.random.normal(k_covs, (components, T), dtype=jnp.float32)

    batch_size = 8
    samples, means_out, lower_cholesky, weights = gmm_forward(
        batch_size, means, log_weights, covs, k_fwd)
    jax.block_until_ready((samples, means_out, lower_cholesky, weights))

    assert samples.shape == (batch_size, dimensions)
    assert means_out.shape == (components, dimensions)
    assert lower_cholesky.shape == (components, dimensions, dimensions)
    assert weights.shape == (components,)

    # sanity: weights sum to 1, strictly-upper-tri part of the Cholesky is zero
    assert abs(float(jnp.sum(weights)) - 1.0) < 1e-5
    assert float(jnp.max(jnp.abs(jnp.triu(lower_cholesky, k=1)))) < 1e-6

    # compare against a pure-JAX reference (same key => same idx / noise)
    r_samples, _, r_L, r_w = _reference(batch_size, means, log_weights, covs, k_fwd)
    assert float(jnp.max(jnp.abs(weights - r_w))) < 1e-5
    assert float(jnp.max(jnp.abs(lower_cholesky - r_L))) < 1e-5
    assert float(jnp.max(jnp.abs(samples - r_samples))) < 1e-4

    print("KERNEL_OK")
</pallas_src>

<mosaic_0001>
module attributes {stable_mosaic.version = 11 : i64} {
  func.func @_sample_kernel(%arg0: i32, %arg1: memref<4x2xf32, #tpu.memory_space<smem>>, %arg2: memref<4x4xf32, #tpu.memory_space<smem>>, %arg3: memref<1x128xi32, #tpu.memory_space<vmem>>, %arg4: memref<2x128xf32, #tpu.memory_space<vmem>>, %arg5: memref<2x128xf32, #tpu.memory_space<vmem>>) attributes {dimension_semantics = [#tpu.dimension_semantics<parallel>], iteration_bounds = array<i64: 1>, scalar_prefetch = 0 : i64, scratch_operands = 0 : i64, tpu.core_type = #tpu.core_type<tc>, window_params = [{transform_indices = @transform_0, window_bounds = array<i64: 4, 2>}, {transform_indices = @transform_1, window_bounds = array<i64: 4, 4>}, {transform_indices = @transform_2, window_bounds = array<i64: 1, 128>}, {transform_indices = @transform_3, window_bounds = array<i64: 2, 128>}, {transform_indices = @transform_4, window_bounds = array<i64: 2, 128>}]} {
    %c0 = arith.constant 0 : index
    %c0_0 = arith.constant 0 : index
    %0 = vector.load %arg3[%c0, %c0_0] : memref<1x128xi32, #tpu.memory_space<vmem>>, vector<1x128xi32>
    %c0_1 = arith.constant 0 : index
    %c0_2 = arith.constant 0 : index
    %1 = vector.load %arg4[%c0_1, %c0_2] : memref<2x128xf32, #tpu.memory_space<vmem>>, vector<2x128xf32>
    %c0_3 = arith.constant 0 : index
    %c0_4 = arith.constant 0 : index
    %2 = memref.load %arg2[%c0_3, %c0_4] : memref<4x4xf32, #tpu.memory_space<smem>>
    %3 = vector.extract_strided_slice %1 {offsets = [0, 0], sizes = [1, 128], strides = [1, 1]} : vector<2x128xf32> to vector<1x128xf32>
    %4 = vector.broadcast %2 : f32 to vector<1x128xf32>
    %5 = arith.mulf %4, %3 : vector<1x128xf32>
    %c0_5 = arith.constant 0 : index
    %c0_6 = arith.constant 0 : index
    %6 = memref.load %arg1[%c0_5, %c0_6] : memref<4x2xf32, #tpu.memory_space<smem>>
    %7 = vector.broadcast %6 : f32 to vector<1x128xf32>
    %8 = arith.addf %5, %7 : vector<1x128xf32>
    %c0_7 = arith.constant 0 : index
    %c2 = arith.constant 2 : index
    %9 = memref.load %arg2[%c0_7, %c2] : memref<4x4xf32, #tpu.memory_space<smem>>
    %10 = vector.extract_strided_slice %1 {offsets = [0, 0], sizes = [1, 128], strides = [1, 1]} : vector<2x128xf32> to vector<1x128xf32>
    %11 = vector.broadcast %9 : f32 to vector<1x128xf32>
    %12 = arith.mulf %11, %10 : vector<1x128xf32>
    %c0_8 = arith.constant 0 : index
    %c3 = arith.constant 3 : index
    %13 = memref.load %arg2[%c0_8, %c3] : memref<4x4xf32, #tpu.memory_space<smem>>
    %14 = vector.extract_strided_slice %1 {offsets = [1, 0], sizes = [1, 128], strides = [1, 1]} : vector<2x128xf32> to vector<1x128xf32>
    %15 = vector.broadcast %13 : f32 to vector<1x128xf32>
    %16 = arith.mulf %15, %14 : vector<1x128xf32>
    %17 = arith.addf %12, %16 : vector<1x128xf32>
    %c0_9 = arith.constant 0 : index
    %c1 = arith.constant 1 : index
    %18 = memref.load %arg1[%c0_9, %c1] : memref<4x2xf32, #tpu.memory_space<smem>>
    %19 = vector.broadcast %18 : f32 to vector<1x128xf32>
    %20 = arith.addf %17, %19 : vector<1x128xf32>
    %c1_i32 = arith.constant 1 : i32
    %21 = vector.broadcast %c1_i32 : i32 to vector<1x128xi32>
    %22 = arith.cmpi eq, %0, %21 : vector<1x128xi32>
    %c1_10 = arith.constant 1 : index
    %c0_11 = arith.constant 0 : index
    %23 = memref.load %arg2[%c1_10, %c0_11] : memref<4x4xf32, #tpu.memory_space<smem>>
    %24 = vector.extract_strided_slice %1 {offsets = [0, 0], sizes = [1, 128], strides = [1, 1]} : vector<2x128xf32> to vector<1x128xf32>
    %25 = vector.broadcast %23 : f32 to vector<1x128xf32>
    %26 = arith.mulf %25, %24 : vector<1x128xf32>
    %c1_12 = arith.constant 1 : index
    %c0_13 = arith.constant 0 : index
    %27 = memref.load %arg1[%c1_12, %c0_13] : memref<4x2xf32, #tpu.memory_space<smem>>
    %28 = vector.broadcast %27 : f32 to vector<1x128xf32>
    %29 = arith.addf %26, %28 : vector<1x128xf32>
    %30 = arith.select %22, %29, %8 : vector<1x128xi1>, vector<1x128xf32>
    %c1_14 = arith.constant 1 : index
    %c2_15 = arith.constant 2 : index
    %31 = memref.load %arg2[%c1_14, %c2_15] : memref<4x4xf32, #tpu.memory_space<smem>>
    %32 = vector.extract_strided_slice %1 {offsets = [0, 0], sizes = [1, 128], strides = [1, 1]} : vector<2x128xf32> to vector<1x128xf32>
    %33 = vector.broadcast %31 : f32 to vector<1x128xf32>
    %34 = arith.mulf %33, %32 : vector<1x128xf32>
    %c1_16 = arith.constant 1 : index
    %c3_17 = arith.constant 3 : index
    %35 = memref.load %arg2[%c1_16, %c3_17] : memref<4x4xf32, #tpu.memory_space<smem>>
    %36 = vector.extract_strided_slice %1 {offsets = [1, 0], sizes = [1, 128], strides = [1, 1]} : vector<2x128xf32> to vector<1x128xf32>
    %37 = vector.broadcast %35 : f32 to vector<1x128xf32>
    %38 = arith.mulf %37, %36 : vector<1x128xf32>
    %39 = arith.addf %34, %38 : vector<1x128xf32>
    %c1_18 = arith.constant 1 : index
    %c1_19 = arith.constant 1 : index
    %40 = memref.load %arg1[%c1_18, %c1_19] : memref<4x2xf32, #tpu.memory_space<smem>>
    %41 = vector.broadcast %40 : f32 to vector<1x128xf32>
    %42 = arith.addf %39, %41 : vector<1x128xf32>
    %43 = arith.select %22, %42, %20 : vector<1x128xi1>, vector<1x128xf32>
    %c2_i32 = arith.constant 2 : i32
    %44 = vector.broadcast %c2_i32 : i32 to vector<1x128xi32>
    %45 = arith.cmpi eq, %0, %44 : vector<1x128xi32>
    %c2_20 = arith.constant 2 : index
    %c0_21 = arith.constant 0 : index
    %46 = memref.load %arg2[%c2_20, %c0_21] : memref<4x4xf32, #tpu.memory_space<smem>>
    %47 = vector.extract_strided_slice %1 {offsets = [0, 0], sizes = [1, 128], strides = [1, 1]} : vector<2x128xf32> to vector<1x128xf32>
    %48 = vector.broadcast %46 : f32 to vector<1x128xf32>
    %49 = arith.mulf %48, %47 : vector<1x128xf32>
    %c2_22 = arith.constant 2 : index
    %c0_23 = arith.constant 0 : index
    %50 = memref.load %arg1[%c2_22, %c0_23] : memref<4x2xf32, #tpu.memory_space<smem>>
    %51 = vector.broadcast %50 : f32 to vector<1x128xf32>
    %52 = arith.addf %49, %51 : vector<1x128xf32>
    %53 = arith.select %45, %52, %30 : vector<1x128xi1>, vector<1x128xf32>
    %c2_24 = arith.constant 2 : index
    %c2_25 = arith.constant 2 : index
    %54 = memref.load %arg2[%c2_24, %c2_25] : memref<4x4xf32, #tpu.memory_space<smem>>
    %55 = vector.extract_strided_slice %1 {offsets = [0, 0], sizes = [1, 128], strides = [1, 1]} : vector<2x128xf32> to vector<1x128xf32>
    %56 = vector.broadcast %54 : f32 to vector<1x128xf32>
    %57 = arith.mulf %56, %55 : vector<1x128xf32>
    %c2_26 = arith.constant 2 : index
    %c3_27 = arith.constant 3 : index
    %58 = memref.load %arg2[%c2_26, %c3_27] : memref<4x4xf32, #tpu.memory_space<smem>>
    %59 = vector.extract_strided_slice %1 {offsets = [1, 0], sizes = [1, 128], strides = [1, 1]} : vector<2x128xf32> to vector<1x128xf32>
    %60 = vector.broadcast %58 : f32 to vector<1x128xf32>
    %61 = arith.mulf %60, %59 : vector<1x128xf32>
    %62 = arith.addf %57, %61 : vector<1x128xf32>
    %c2_28 = arith.constant 2 : index
    %c1_29 = arith.constant 1 : index
    %63 = memref.load %arg1[%c2_28, %c1_29] : memref<4x2xf32, #tpu.memory_space<smem>>
    %64 = vector.broadcast %63 : f32 to vector<1x128xf32>
    %65 = arith.addf %62, %64 : vector<1x128xf32>
    %66 = arith.select %45, %65, %43 : vector<1x128xi1>, vector<1x128xf32>
    %c3_i32 = arith.constant 3 : i32
    %67 = vector.broadcast %c3_i32 : i32 to vector<1x128xi32>
    %68 = arith.cmpi eq, %0, %67 : vector<1x128xi32>
    %c3_30 = arith.constant 3 : index
    %c0_31 = arith.constant 0 : index
    %69 = memref.load %arg2[%c3_30, %c0_31] : memref<4x4xf32, #tpu.memory_space<smem>>
    %70 = vector.extract_strided_slice %1 {offsets = [0, 0], sizes = [1, 128], strides = [1, 1]} : vector<2x128xf32> to vector<1x128xf32>
    %71 = vector.broadcast %69 : f32 to vector<1x128xf32>
    %72 = arith.mulf %71, %70 : vector<1x128xf32>
    %c3_32 = arith.constant 3 : index
    %c0_33 = arith.constant 0 : index
    %73 = memref.load %arg1[%c3_32, %c0_33] : memref<4x2xf32, #tpu.memory_space<smem>>
    %74 = vector.broadcast %73 : f32 to vector<1x128xf32>
    %75 = arith.addf %72, %74 : vector<1x128xf32>
    %76 = arith.select %68, %75, %53 : vector<1x128xi1>, vector<1x128xf32>
    %c3_34 = arith.constant 3 : index
    %c2_35 = arith.constant 2 : index
    %77 = memref.load %arg2[%c3_34, %c2_35] : memref<4x4xf32, #tpu.memory_space<smem>>
    %78 = vector.extract_strided_slice %1 {offsets = [0, 0], sizes = [1, 128], strides = [1, 1]} : vector<2x128xf32> to vector<1x128xf32>
    %79 = vector.broadcast %77 : f32 to vector<1x128xf32>
    %80 = arith.mulf %79, %78 : vector<1x128xf32>
    %c3_36 = arith.constant 3 : index
    %c3_37 = arith.constant 3 : index
    %81 = memref.load %arg2[%c3_36, %c3_37] : memref<4x4xf32, #tpu.memory_space<smem>>
    %82 = vector.extract_strided_slice %1 {offsets = [1, 0], sizes = [1, 128], strides = [1, 1]} : vector<2x128xf32> to vector<1x128xf32>
    %83 = vector.broadcast %81 : f32 to vector<1x128xf32>
    %84 = arith.mulf %83, %82 : vector<1x128xf32>
    %85 = arith.addf %80, %84 : vector<1x128xf32>
    %c3_38 = arith.constant 3 : index
    %c1_39 = arith.constant 1 : index
    %86 = memref.load %arg1[%c3_38, %c1_39] : memref<4x2xf32, #tpu.memory_space<smem>>
    %87 = vector.broadcast %86 : f32 to vector<1x128xf32>
    %88 = arith.addf %85, %87 : vector<1x128xf32>
    %89 = arith.select %68, %88, %66 : vector<1x128xi1>, vector<1x128xf32>
    %90 = tpu.concatenate %76, %89 in 0 : vector<1x128xf32>, vector<1x128xf32> -> vector<2x128xf32>
    %c0_40 = arith.constant 0 : index
    %c0_41 = arith.constant 0 : index
    %91 = vector.load %arg5[%c0_40, %c0_41] : memref<2x128xf32, #tpu.memory_space<vmem>>, vector<2x128xf32>
    tpu.vector_store %arg5[%c0_40, %c0_41], %90 {strides = array<i32>} : memref<2x128xf32, #tpu.memory_space<vmem>>, vector<2x128xf32>,
    return
  }
  func.func @transform_0(%arg0: i32) -> (i32, i32) {
    %c0_i32 = arith.constant 0 : i32
    %c0_i32_0 = arith.constant 0 : i32
    %c0_i32_1 = arith.constant 0 : i32
    return %c0_i32, %c0_i32_0 : i32, i32
  }
  func.func @transform_1(%arg0: i32) -> (i32, i32) {
    %c0_i32 = arith.constant 0 : i32
    %c0_i32_0 = arith.constant 0 : i32
    %c0_i32_1 = arith.constant 0 : i32
    return %c0_i32, %c0_i32_0 : i32, i32
  }
  func.func @transform_2(%arg0: i32) -> (i32, i32) {
    %c0_i32 = arith.constant 0 : i32
    %c0_i32_0 = arith.constant 0 : i32
    return %c0_i32, %arg0 : i32, i32
  }
  func.func @transform_3(%arg0: i32) -> (i32, i32) {
    %c0_i32 = arith.constant 0 : i32
    %c0_i32_0 = arith.constant 0 : i32
    return %c0_i32, %arg0 : i32, i32
  }
  func.func @transform_4(%arg0: i32) -> (i32, i32) {
    %c0_i32 = arith.constant 0 : i32
    %c0_i32_0 = arith.constant 0 : i32
    return %c0_i32, %arg0 : i32, i32
  }
}

module attributes {stable_mosaic.version = 11 : i64} {
  func.func @_prep_kernel(%arg0: memref<1x4xf32, #tpu.memory_space<vmem>>, %arg1: memref<4x3xf32, #tpu.memory_space<vmem>>, %arg2: memref<1x4xf32, #tpu.memory_space<vmem>>, %arg3: memref<4x4xf32, #tpu.memory_space<vmem>>) attributes {dimension_semantics = [], scalar_prefetch = 0 : i64, scratch_operands = 0 : i64, tpu.core_type = #tpu.core_type<tc>} {
    %c0 = arith.constant 0 : index
    %c0_0 = arith.constant 0 : index
    %0 = vector.load %arg0[%c0, %c0_0] : memref<1x4xf32, #tpu.memory_space<vmem>>, vector<1x4xf32>
    %cst = arith.constant dense<0xFF800000> : vector<1xf32>
    %1 = vector.multi_reduction <maximumf>, %0, %cst [1] : vector<1x4xf32> to vector<1xf32>
    %2 = vector.shape_cast %1 : vector<1xf32> to vector<1x1xf32>
    %3 = vector.broadcast %2 : vector<1x1xf32> to vector<1x4xf32>
    %4 = arith.subf %0, %3 : vector<1x4xf32>
    %5 = math.exp %4 : vector<1x4xf32>
    %cst_1 = arith.constant dense<0.000000e+00> : vector<1xf32>
    %6 = vector.multi_reduction <add>, %5, %cst_1 [1] : vector<1x4xf32> to vector<1xf32>
    %7 = vector.shape_cast %6 : vector<1xf32> to vector<1x1xf32>
    %8 = tpu.reciprocal %7 : vector<1x1xf32> -> vector<1x1xf32>
    %9 = vector.broadcast %8 : vector<1x1xf32> to vector<1x4xf32>
    %10 = arith.mulf %5, %9 : vector<1x4xf32>
    %c0_2 = arith.constant 0 : index
    %c0_3 = arith.constant 0 : index
    %11 = vector.load %arg2[%c0_2, %c0_3] : memref<1x4xf32, #tpu.memory_space<vmem>>, vector<1x4xf32>
    tpu.vector_store %arg2[%c0_2, %c0_3], %10 {strides = array<i32>} : memref<1x4xf32, #tpu.memory_space<vmem>>, vector<1x4xf32>,
    %c0_4 = arith.constant 0 : index
    %c0_5 = arith.constant 0 : index
    %12 = vector.load %arg1[%c0_4, %c0_5] : memref<4x3xf32, #tpu.memory_space<vmem>>, vector<4x3xf32>
    %13 = tpu.iota {dimensions = array<i32: 1>} : vector<4x4xi32>
    %cst_6 = arith.constant 0.000000e+00 : f32
    %14 = vector.broadcast %cst_6 : f32 to vector<4x4xf32>
    %15 = vector.extract_strided_slice %12 {offsets = [0, 0], sizes = [4, 1], strides = [1, 1]} : vector<4x3xf32> to vector<4x1xf32>
    %cst_7 = arith.constant 0.000000e+00 : f32
    %16 = vector.broadcast %cst_7 : f32 to vector<4x1xf32>
    %17 = arith.maximumf %15, %16 : vector<4x1xf32>
    %18 = vector.broadcast %cst_7 : f32 to vector<4x1xf32>
    %19 = arith.subf %15, %18 : vector<4x1xf32>
    %20 = arith.cmpf one, %19, %19 : vector<4x1xf32>
    %21 = vector.broadcast %cst_7 : f32 to vector<4x1xf32>
    %22 = arith.addf %15, %21 : vector<4x1xf32>
    %23 = math.absf %19 : vector<4x1xf32>
    %cst_8 = arith.constant 0.000000e+00 : f32
    %24 = vector.broadcast %cst_8 : f32 to vector<4x1xf32>
    %25 = arith.subf %24, %23 : vector<4x1xf32>
    %26 = math.exp %25 : vector<4x1xf32>
    %27 = math.log1p %26 : vector<4x1xf32>
    %28 = arith.addf %17, %27 : vector<4x1xf32>
    %29 = arith.select %20, %22, %28 : vector<4x1xi1>, vector<4x1xf32>
    %c0_i32 = arith.constant 0 : i32
    %30 = vector.broadcast %c0_i32 : i32 to vector<4x4xi32>
    %31 = arith.cmpi eq, %13, %30 : vector<4x4xi32>
    %32 = vector.shape_cast %29 : vector<4x1xf32> to vector<4x1xf32>
    %33 = vector.broadcast %32 : vector<4x1xf32> to vector<4x4xf32>
    %34 = arith.select %31, %33, %14 : vector<4x4xi1>, vector<4x4xf32>
    %35 = vector.extract_strided_slice %12 {offsets = [0, 1], sizes = [4, 1], strides = [1, 1]} : vector<4x3xf32> to vector<4x1xf32>
    %c2_i32 = arith.constant 2 : i32
    %36 = vector.broadcast %c2_i32 : i32 to vector<4x4xi32>
    %37 = arith.cmpi eq, %13, %36 : vector<4x4xi32>
    %38 = vector.shape_cast %35 : vector<4x1xf32> to vector<4x1xf32>
    %39 = vector.broadcast %38 : vector<4x1xf32> to vector<4x4xf32>
    %40 = arith.select %37, %39, %34 : vector<4x4xi1>, vector<4x4xf32>
    %41 = vector.extract_strided_slice %12 {offsets = [0, 2], sizes = [4, 1], strides = [1, 1]} : vector<4x3xf32> to vector<4x1xf32>
    %cst_9 = arith.constant 0.000000e+00 : f32
    %42 = vector.broadcast %cst_9 : f32 to vector<4x1xf32>
    %43 = arith.maximumf %41, %42 : vector<4x1xf32>
    %44 = vector.broadcast %cst_9 : f32 to vector<4x1xf32>
    %45 = arith.subf %41, %44 : vector<4x1xf32>
    %46 = arith.cmpf one, %45, %45 : vector<4x1xf32>
    %47 = vector.broadcast %cst_9 : f32 to vector<4x1xf32>
    %48 = arith.addf %41, %47 : vector<4x1xf32>
    %49 = math.absf %45 : vector<4x1xf32>
    %cst_10 = arith.constant 0.000000e+00 : f32
    %50 = vector.broadcast %cst_10 : f32 to vector<4x1xf32>
    %51 = arith.subf %50, %49 : vector<4x1xf32>
    %52 = math.exp %51 : vector<4x1xf32>
    %53 = math.log1p %52 : vector<4x1xf32>
    %54 = arith.addf %43, %53 : vector<4x1xf32>
    %55 = arith.select %46, %48, %54 : vector<4x1xi1>, vector<4x1xf32>
    %c3_i32 = arith.constant 3 : i32
    %56 = vector.broadcast %c3_i32 : i32 to vector<4x4xi32>
    %57 = arith.cmpi eq, %13, %56 : vector<4x4xi32>
    %58 = vector.shape_cast %55 : vector<4x1xf32> to vector<4x1xf32>
    %59 = vector.broadcast %58 : vector<4x1xf32> to vector<4x4xf32>
    %60 = arith.select %57, %59, %40 : vector<4x4xi1>, vector<4x4xf32>
    %c0_11 = arith.constant 0 : index
    %c0_12 = arith.constant 0 : index
    %61 = vector.load %arg3[%c0_11, %c0_12] : memref<4x4xf32, #tpu.memory_space<vmem>>, vector<4x4xf32>
    tpu.vector_store %arg3[%c0_11, %c0_12], %60 {strides = array<i32>} : memref<4x4xf32, #tpu.memory_space<vmem>>, vector<4x4xf32>,
    return
  }
}

</mosaic_0001>

<bundles_post_ra>
// kernel: gmm_forward.5
= control target key start
LH: loop header
LB: loop body
LE: loop exit
PB: predicated region body
PF: predicated region fallthrough
CT: control target
= control target key end

     0   :  { %9 = vsyncpa [#allocation3], 0  ;;  %s264_s0 = inlined_call_operand.vmem [shape: f32[4,2], index: 0, kind: input, shape index: {}]   ;;  %s265_s1 = inlined_call_operand.vmem [shape: f32[4,4], index: 1, kind: input, shape index: {}]   ;;  %s266_s2 = inlined_call_operand.vmem [shape: s32[1,128], index: 2, kind: input, shape index: {}]   ;;  %s267_s3 = inlined_call_operand.vmem [shape: f32[2,128], index: 3, kind: input, shape index: {}]   ;;  %s268_s4 = inlined_call_operand.vmem [shape: f32[2,128], index: 4, kind: output, shape index: {}]  }
   0x1   :  { %s17_s17 = sshll.u32 %s264_s0, 4  ;;  %s18_s17 = int_to_ptr.vmem [resolvable:$true] %s17_s17 }
   0x2   :  { %10 = vsyncpa [#allocation5], 0  ;;  %s27_s20 = sshll.u32 %s265_s1, 4  ;;  %s164_s21 = scalar_lea.vmem %s18_s17, 64  ;;  %s28_s20 = int_to_ptr.vmem [resolvable:$true] %s27_s20 }
   0x3   :  { %p165_p0 = scmp.ne.s32.totalorder %s18_s17, %s164_s21  ;;  %p169_p1 = scmp.lt.s32.totalorder %s18_s17, %s18_s17 }
   0x4   :  { %p170_p2 = scmp.lt.s32.totalorder %s164_s21, %s164_s21 }
   0x6   :  { %p171_p3 = por %p170_p2, %p169_p1 }
   0x8   :  { %p172_p4 = pnand %p171_p3, %p165_p0 }
   0xa   :  { %175 = shalt.err (!%p172_p4)
}
   0xb   :  { %s192_s22 = smov [#allocation2]   ;;  %s176_s23 = scalar_lea.vmem %s28_s20, 64 }
   0xc   :  { %20 = dma.vmem_to_smem %s18_s17, 64, %s192_s22, [#allocation3]  }
   0xd   :  { %p177_p5 = scmp.ne.s32.totalorder %s28_s20, %s176_s23  ;;  %p181_p6 = scmp.lt.s32.totalorder %s28_s20, %s28_s20 }
   0xe   :  { %p182_p7 = scmp.lt.s32.totalorder %s176_s23, %s176_s23 }
  0x10   :  { %p183_p8 = por %p182_p7, %p181_p6 }
  0x12   :  { %p184_p9 = pnand %p183_p8, %p177_p5 }
  0x14   :  { %187 = shalt.err (!%p184_p9)
}
  0x15   :  { %s193_s0 = smov [#allocation4]  }
  0x16   :  { %30 = dma.vmem_to_smem %s28_s20, 64, %s193_s0, [#allocation5]  }
  0x17   :  { %188 = dma.done.wait [#allocation3], 64  }
  0x18   :  { %189 = vsyncadd [#allocation3], 4294967232 }
  0x19   :  { %190 = dma.done.wait [#allocation5], 64  }
  0x1a   :  { %191 = vsyncadd [#allocation5], 4294967232 }
  0x1b   :  { %41 = sfence }
  0x1c   :  { %s44_s1 = sld [smem:[#allocation4]]  ;;  %v43_v0 = vld [vmem:[%s267_s3] sm:$0x3]  ;;  %v130_v29 = vlaneseq  ;;  %vm135_vm3 = vcmask 1040384  }
  0x1d   :  { %s225_s24 = sld [smem:[#allocation2]]  ;;  %v42_v26 = vld [vmem:[%s266_s2] sm:$0x1] }
  0x1e   :  { %s144_s25 = sld [smem:[#allocation4 + $0x2]]  ;;  %vm63_vm0 = vcmp.eq.s32.totalorder %v42_v26, 1  ;;  %v131_v46 = vshrl.u32 %v130_v29, 7  ;;  %vm85_vm1 = vcmp.eq.s32.totalorder %v42_v26, 2  ;;  %vm107_vm2 = vcmp.eq.s32.totalorder %v42_v26, 3 }
  0x1f   :  { %s145_s26 = sld [smem:[#allocation4 + $0x3]] }
  0x20   :  { %s227_s27 = sld [smem:[#allocation2 + $0x1]]  ;;  %v132_v55 = vsub.s32 0, %v131_v46 }
  0x21   :  { %s147_s28 = sld [smem:[#allocation4 + $0x80]] }
  0x22   :  { %s229_s29 = sld [smem:[#allocation2 + $0x80]]  ;;  %v45_v4 = vstv %s44_s1 }
  0x23   :  { %s149_s6 = sld [smem:[#allocation4 + $0x82]]  ;;  %v46_v12 = vmul.f32 %v45_v4, %v43_v0  ;;  %v48_v15 = vstv %s225_s24 }
  0x24   :  { %s150_s7 = sld [smem:[#allocation4 + $0x83]]  ;;  %v51_v3 = vstv %s144_s25 }
  0x25   :  { %v54_v1 = vstv %s145_s26  ;;  %s234_s8 = sld [smem:[#allocation2 + $0x81]]  ;;  %v52_v6 = vmul.f32 %v51_v3, %v43_v0  ;;  %v49_v27 = vadd.f32 %v48_v15, %v46_v12 }
  0x26   :  { %v55_v2 = vmul.f32 %v54_v1, %v43_v0  ;;  %s236_s9 = sld [smem:[#allocation4 + $0x100]]  ;;  %v61_v19 = vstv %s227_s27 }
  0x27   :  { %s238_s10 = sld [smem:[#allocation2 + $0x100]]  ;;  %v65_v8 = vstv %s147_s28 }
  0x28   :  { %s154_s11 = sld [smem:[#allocation4 + $0x102]]  ;;  %v57_v7 = vrot.slane %v55_v2, 1  ;;  %v66_v13 = vmul.f32 %v65_v8, %v43_v0  ;;  %v68_v17 = vstv %s229_s29 }
  0x29   :  { %v72_v5 = vstv %s149_s6  ;;  %s155_s12 = sld [smem:[#allocation4 + $0x103]] }
  0x2a   :  { %v75_v9 = vstv %s150_s7  ;;  %s240_s3 = sld [smem:[#allocation2 + $0x101]]  ;;  %v73_v10 = vmul.f32 %v72_v5, %v43_v0  ;;  %v59_v16 = vadd.f32 %v57_v7, %v52_v6  ;;  %v69_v28 = vadd.f32 %v68_v17, %v66_v13 }
  0x2b   :  { %v76_v11 = vmul.f32 %v75_v9, %v43_v0  ;;  %s242_s13 = sld [smem:[#allocation4 + $0x180]]  ;;  %v82_v23 = vstv %s234_s8 }
  0x2c   :  { %s244_s14 = sld [smem:[#allocation2 + $0x180]]  ;;  %v87_v21 = vstv %s236_s9  ;;  %v62_v30 = vadd.f32 %v61_v19, %v59_v16  ;;  %v70_v47 = vsel %vm63_vm0, %v69_v28, %v49_v27 }
  0x2d   :  { %v78_v14 = vrot.slane %v76_v11, 1  ;;  %s159_s15 = sld [smem:[#allocation4 + $0x182]]  ;;  %v88_v31 = vmul.f32 %v87_v21, %v43_v0  ;;  %v90_v35 = vstv %s238_s10 }
  0x2e   :  { %v94_v18 = vstv %s154_s11  ;;  %s160_s16 = sld [smem:[#allocation4 + $0x183]] }
  0x2f   :  { %v80_v20 = vadd.f32 %v78_v14, %v73_v10  ;;  %v97_v22 = vstv %s155_s12  ;;  %v95_v24 = vmul.f32 %v94_v18, %v43_v0  ;;  %s251_s17 = sld [smem:[#allocation2 + $0x181]]  ;;  %v91_v43 = vadd.f32 %v90_v35, %v88_v31 }
  0x30   :  { %v98_v25 = vmul.f32 %v97_v22, %v43_v0  ;;  %v104_v36 = vstv %s240_s3 }
  0x31   :  { %v109_v33 = vstv %s242_s13  ;;  %v83_v34 = vadd.f32 %v82_v23, %v80_v20  ;;  %v92_v53 = vsel %vm85_vm1, %v91_v43, %v70_v47 }
  0x32   :  { %v100_v32 = vrot.slane %v98_v25, 1  ;;  %v110_v40 = vmul.f32 %v109_v33, %v43_v0  ;;  %v112_v45 = vstv %s244_s14 }
  0x33   :  { %v116_v37 = vstv %s159_s15  ;;  %v84_v48 = vsel %vm63_vm0, %v83_v34, %v62_v30 }
  0x34   :  { %v102_v38 = vadd.f32 %v100_v32, %v95_v24  ;;  %v119_v39 = vstv %s160_s16  ;;  %v117_v41 = vmul.f32 %v116_v37, %v43_v0  ;;  %v113_v51 = vadd.f32 %v112_v45, %v110_v40 }
  0x35   :  { %v120_v42 = vmul.f32 %v119_v39, %v43_v0  ;;  %v126_v50 = vstv %s251_s17 }
  0x36   :  { %v105_v44 = vadd.f32 %v104_v36, %v102_v38  ;;  %v114_v57 = vsel %vm107_vm2, %v113_v51, %v92_v53 }
  0x37   :  { %v122_v49 = vrot.slane %v120_v42, 1 }
  0x38   :  { %v106_v54 = vsel %vm85_vm1, %v105_v44, %v84_v48 }
  0x39   :  { %v124_v52 = vadd.f32 %v122_v49, %v117_v41 }
  0x3b   :  { %v127_v56 = vadd.f32 %v126_v50, %v124_v52 }
  0x3d   :  { %v128_v58 = vsel %vm107_vm2, %v127_v56, %v106_v54 }
  0x3e   :  { %v133_v59 = vrot.slane %v128_v58, %v132_v55 }
  0x40   :  { %v136_v60 = vsel %vm135_vm3, %v114_v57, %v133_v59 }
  0x41   :  { %137 = vst [vmem:[%s268_s4] sm:$0x3] %v136_v60 }
  0x42   :  { %142 = vsyncpa [#allocation3], 1 }
  0x43   :  { %143 = vsyncpa [#allocation5], 1 }

// kernel: gmm_forward.4
= control target key start
LH: loop header
LB: loop body
LE: loop exit
PB: predicated region body
PF: predicated region fallthrough
CT: control target
= control target key end

     0   :  { %vm15_vm0 = vcmask 24576   ;;  %s165_s0 = inlined_call_operand.vmem [shape: f32[1,4], index: 0, kind: input, shape index: {}]   ;;  %s166_s1 = inlined_call_operand.vmem [shape: f32[4,3], index: 1, kind: input, shape index: {}]   ;;  %s167_s2 = inlined_call_operand.hbm [shape: f32[1,4], index: 2, kind: output, shape index: {0}]   ;;  %s168_s3 = inlined_call_operand.vmem [shape: f32[4,4], index: 3, kind: output, shape index: {1}]  }
   0x1   :  { %v14_v0 = vld [vmem:[%s165_s0] sm:$0x1] }
   0x2   :  { %9 = vsyncpa [#allocation3], 0  ;;  %v16_v1 = vsel %vm15_vm0, %v14_v0, -inf  ;;  %v28_v2 = vld [vmem:[%s166_s1] sm:$0xf]  ;;  %v126_v8 = vmov 0   ;;  %v29_v26 = vlaneseq }
   0x3   :  { %17 = vmax.xlane.f32.xlu0 %v16_v1  ;;  %v34_v3 = vand.u32 2147483647, %v28_v2  ;;  %93 = vset.pattern.permute.xlu1 %v126_v8  ;;  %v127_v9 = vmov 2   ;;  %v31_v15 = vmax.f32 %v28_v2, 0.0  ;;  %vm32_vm2 = vcmp.ne.f32.partialorder %v28_v2, %v28_v2  ;;  %s129_s16 = smov [#allocation2]  }
   0x4   :  { %95 = vset.pattern.permute.xlu0 %v127_v9  ;;  %v128_v20 = vmov 1   ;;  %v30_v27 = vand.u32 127, %v29_v26  ;;  %vm69_vm6 = vcmask 27648   ;;  %s77_s17 = sshll.u32 %s129_s16, 4  ;;  %s78_s17 = int_to_ptr.vmem [resolvable:$true] %s77_s17 }
   0x5   :  { %v35_v4 = vsub.f32 0.0, %v34_v3  ;;  %s104_s18 = scalar_lea.vmem %s78_s17, 16  ;;  %s108_s19 = scalar_lea.vmem %s78_s17, 32 }
   0x6   :  { %vm49_vm3 = vcmp.eq.s32.totalorder %v30_v27, 0  ;;  %vm56_vm4 = vcmp.eq.s32.totalorder %v30_v27, 2  ;;  %vm63_vm5 = vcmp.eq.s32.totalorder %v30_v27, 3  ;;  %p105_p0 = scmp.ne.s32.totalorder %s78_s17, %s104_s18  ;;  %p109_p1 = scmp.lt.s32.totalorder %s78_s17, %s78_s17 }
   0x7   :  { %v36_v5 = vmul.f32 1.442695, %v35_v4  ;;  %p110_p2 = scmp.lt.s32.totalorder %s108_s19, %s104_s18 }
   0x9   :  { %96 = vpow2.f32 %v36_v5  ;;  %p111_p3 = por %p110_p2, %p109_p1 }
   0xb   :  { %p112_p4 = pnand %p111_p3, %p105_p0 }
  0x16   :  { %v97_v6 = vpop.eup %96 }
  0x17   :  { %v38_v7 = vadd.f32 1.0, %v97_v6  ;;  %v41_v10 = vmul.f32 -0.5, %v97_v6  ;;  %v44_v12 = vand.u32 2147483647, %v97_v6 }
  0x19   :  { %98 = vlog2.f32 %v38_v7  ;;  %v42_v11 = vadd.f32 1.0, %v41_v10  ;;  %vm45_vm1 = vcmp.lt.f32.partialorder %v44_v12, 0.0004427343 }
  0x1b   :  { %v43_v13 = vmul.f32 %v97_v6, %v42_v11 }
  0x26   :  { %v99_v14 = vpop.eup %98 }
  0x27   :  { %v40_v16 = vmul.f32 0.6931472, %v99_v14 }
  0x29   :  { %v46_v17 = vsel %vm45_vm1, %v43_v13, %v40_v16 }
  0x2a   :  { %v47_v18 = vadd.f32 %v46_v17, %v31_v15 }
  0x2c   :  { %v48_v19 = vsel %vm32_vm2, %v28_v2, %v47_v18 }
  0x2d   :  { %52 = vperm.xlu1 %93, %v48_v19  }
  0x31   :  { %94 = vset.pattern.permute.xlu1 %v128_v20 }
  0x32   :  { %59 = vperm.xlu1 %94, %v28_v2  }
  0x8c   :  { %v18_v21 = vpop.xlane.xlu0 %17 }
  0x8d   :  { %v19_v22 = vsub.f32 %v14_v0, %v18_v21 }
  0x8f   :  { %v20_v23 = vmul.f32 1.442695, %v19_v22 }
  0x91   :  { %100 = vpow2.f32 %v20_v23 }
  0x9e   :  { %v101_v24 = vpop.eup %100 }
  0x9f   :  { %v22_v25 = vsel %vm15_vm0, %v101_v24, 0.0 }
  0xa0   :  { %23 = vadd.xlane.f32.xlu0 %v22_v25 }
  0xa8   :  { %v53_v28 = vpop.permute.xlu1 %52 }
  0xa9   :  { %v55_v30 = vsel %vm49_vm3, %v53_v28, 0.0 }
  0xad   :  { %v60_v31 = vpop.permute.xlu1 %59 }
  0xae   :  { %v62_v32 = vsel %vm56_vm4, %v60_v31, %v55_v30 }
  0xb6   :  { %65 = vperm.xlu0 %95, %v48_v19  }
 0x129   :  { %v24_v29 = vpop.xlane.xlu0 %23 }
 0x12a   :  { %102 = vrcp.f32 %v24_v29 }
 0x131   :  { %v66_v33 = vpop.permute.xlu0 %65 }
 0x132   :  { %v68_v34 = vsel %vm63_vm5, %v66_v33, %v62_v32 }
 0x133   :  { %70 = vst.msk [vmem:[%s168_s3] sm:$0xf] %vm69_vm6, %v68_v34 }
 0x137   :  { %v103_v35 = vpop.eup %102 }
 0x138   :  { %v26_v36 = vmul.f32 %v103_v35, %v101_v24 }
 0x13a   :  { %27 = vst.msk [vmem:[#allocation2] sm:$0x1] %vm15_vm0, %v26_v36 }
 0x13b   :  { %115 = shalt.err (!%p112_p4)
}
 0x13c   :  { %80 = dma.vmem_to_hbm [thread:$0]  %s78_s17, 16, %s167_s2, [#allocation3]  }
 0x13d   :  { %124 = dma.done.wait [#allocation3], 16  }
 0x13e   :  { %125 = vsyncadd [#allocation3], 4294967280 }
 0x13f   :  { %88 = vsyncpa [#allocation3], 1 }

</bundles_post_ra>
